<compile_context>
chip_gen: v5e
topology: v5e:2x2
jax: 0.10.0
libtpu: 0.0.40
codegen_flags: <defaults>
</compile_context>

<pallas_src>
import math

import jax
import jax.numpy as jnp
from jax.experimental import pallas as pl
from jax.experimental.pallas import tpu as pltpu


def _identity_kernel(x_ref, o_ref):
    # Pure pass-through: copy the VMEM tile to the output tile.
    o_ref[...] = x_ref[...]


def identity_forward(x):
    """Identity forward pass as a single Pallas TPU kernel."""
    orig_shape = x.shape

    # Present the data as a 2-D [rows, lanes] slab (lanes = last dim).
    if x.ndim == 0:
        x2 = x.reshape(1, 1)
    elif x.ndim == 1:
        x2 = x.reshape(1, x.shape[0])
    else:
        rows = math.prod(orig_shape[:-1])
        x2 = x.reshape(rows, orig_shape[-1])

    R, C = x2.shape

    # Small inputs: one whole-array block, one grid point, no pipelining
    # scaffolding. Large inputs: tile the row axis (multiple of 8 sublanes),
    # keep the lane axis whole (lane-dense stores), shard rows across cores.
    if R <= 512:
        tm = R
    else:
        tm = 512

    out2 = pl.pallas_call(
        _identity_kernel,
        out_shape=jax.ShapeDtypeStruct((R, C), x.dtype),
        grid=(pl.cdiv(R, tm),),
        in_specs=[pl.BlockSpec((tm, C), lambda i: (i, 0))],
        out_specs=pl.BlockSpec((tm, C), lambda i: (i, 0)),
        compiler_params=pltpu.CompilerParams(
            dimension_semantics=("parallel",),
        ),
    )(x2)

    return out2.reshape(orig_shape)


if __name__ == "__main__":
    key = jax.random.PRNGKey(0)

    # Small, lane-dense example shape: 8 rows x 128 features (f32).
    batch, features = 8, 128
    x = jax.random.normal(key, (batch, features), dtype=jnp.float32)

    out = identity_forward(x)
    out = jax.block_until_ready(out)

    assert out.shape == x.shape
    assert out.dtype == x.dtype
    assert jnp.array_equal(out, x), "identity kernel output != input"

    print("KERNEL_OK")
</pallas_src>

<mosaic_0001>
module attributes {stable_mosaic.version = 11 : i64} {
  func.func @_identity_kernel(%arg0: i32, %arg1: memref<8x128xf32, #tpu.memory_space<vmem>>, %arg2: memref<8x128xf32, #tpu.memory_space<vmem>>) attributes {dimension_semantics = [#tpu.dimension_semantics<parallel>], iteration_bounds = array<i64: 1>, scalar_prefetch = 0 : i64, scratch_operands = 0 : i64, tpu.core_type = #tpu.core_type<tc>, window_params = [{transform_indices = @transform_0, window_bounds = array<i64: 8, 128>}, {transform_indices = @transform_1, window_bounds = array<i64: 8, 128>}]} {
    %c0 = arith.constant 0 : index
    %c0_0 = arith.constant 0 : index
    %0 = vector.load %arg1[%c0, %c0_0] : memref<8x128xf32, #tpu.memory_space<vmem>>, vector<8x128xf32>
    %c0_1 = arith.constant 0 : index
    %c0_2 = arith.constant 0 : index
    %1 = vector.load %arg2[%c0_1, %c0_2] : memref<8x128xf32, #tpu.memory_space<vmem>>, vector<8x128xf32>
    tpu.vector_store %arg2[%c0_1, %c0_2], %0 {strides = array<i32>} : memref<8x128xf32, #tpu.memory_space<vmem>>, vector<8x128xf32>,
    return
  }
  func.func @transform_0(%arg0: i32) -> (i32, i32) {
    %c0_i32 = arith.constant 0 : i32
    %c0_i32_0 = arith.constant 0 : i32
    return %arg0, %c0_i32 : i32, i32
  }
  func.func @transform_1(%arg0: i32) -> (i32, i32) {
    %c0_i32 = arith.constant 0 : i32
    %c0_i32_0 = arith.constant 0 : i32
    return %arg0, %c0_i32 : i32, i32
  }
}

</mosaic_0001>

<bundles_post_ra>
// kernel: tpu_custom_call.1
= control target key start
LH: loop header
LB: loop body
LE: loop exit
PB: predicated region body
PF: predicated region fallthrough
CT: control target
= control target key end

     0   :  { %6 = vsyncpa [#allocation3], 0  ;;  %s114_s0 = inlined_call_operand.hbm [shape: f32[8,128], index: 0, kind: input, shape index: {}]   ;;  %s115_s1 = inlined_call_operand.hbm [shape: f32[8,128], index: 1, kind: output, shape index: {}]  }
   0x1   :  { %7 = vsyncpa [#allocation4], 0  ;;  %s13_s8 = sshll.u32 %s114_s0, 4  ;;  %s96_s9 = smov [#allocation2]   ;;  %s14_s8 = int_to_ptr.hbm [resolvable:$true] %s13_s8 }
   0x2   :  { %s15_s10 = sshll.u32 %s96_s9, 4  ;;  %s16_s10 = int_to_ptr.vmem [resolvable:$true] %s15_s10 }
   0x3   :  { %18 = dma.hbm_to_vmem [thread:$0]  %s14_s8, 128, %s16_s10, [#allocation3]  }
   0x4   :  { %92 = dma.done.wait [#allocation3], 128  }
   0x5   :  { %93 = vsyncadd [#allocation3], 4294967168  ;;  %s97_s11 = smov [#allocation5]   ;;  %s32_s15 = sshll.u32 %s115_s1, 4  ;;  %v23_v0 = vld [vmem:[#allocation2] sm:$0xff]  ;;  %s33_s15 = int_to_ptr.hbm [resolvable:$true] %s32_s15 }
   0x6   :  { %s30_s12 = sshll.u32 %s97_s11, 4  ;;  %24 = vst [vmem:[#allocation5] sm:$0xff] %v23_v0  ;;  %s31_s12 = int_to_ptr.vmem [resolvable:$true] %s30_s12 }
   0x7   :  { %35 = dma.vmem_to_hbm [thread:$0]  %s31_s12, 128, %s33_s15, [#allocation4]  }
   0x8   :  { %94 = dma.done.wait [#allocation4], 128  }
   0x9   :  { %95 = vsyncadd [#allocation4], 4294967168 }
   0xa   :  { %40 = vsyncpa [#allocation3], 1 }
   0xb   :  { %41 = vsyncpa [#allocation4], 1 }

</bundles_post_ra>
